<compile_context>
chip_gen: v7x
topology: tpu7x:2x2x1
jax: 0.10.0
libtpu: 0.0.40
codegen_flags: <defaults>
</compile_context>

<pallas_src>
import functools

import jax
import jax.numpy as jnp
from jax.experimental import pallas as pl
from jax.experimental.pallas import tpu as pltpu

EPS = 1e-3  # nn.BatchNorm2d(eps=0.001)


# ------------------------------------------------------------------ roll probe
@functools.cache
def _roll_matches_jnp() -> bool:
    """True iff pltpu.roll follows jnp.roll semantics: out[i] = x[(i - shift) % n]."""

    def kern(x_ref, o_ref):
        o_ref[...] = pltpu.roll(x_ref[...], shift=1, axis=0)

    x = jax.lax.broadcasted_iota(jnp.float32, (8, 128), 0)
    y = pl.pallas_call(kern, out_shape=jax.ShapeDtypeStruct((8, 128), jnp.float32))(x)
    return bool(y[0, 0] == 7.0)


# ----------------------------------------------------------- in-kernel helpers
def _bn_relu(y, gamma, beta):
    """Training-mode BatchNorm (batch stats, biased variance) + ReLU. y: (R, C) f32."""
    r = y.shape[0]
    mean = jnp.sum(y, axis=0, keepdims=True) * (1.0 / r)
    yc = y - mean                                    # centered -> well-conditioned var
    var = jnp.sum(yc * yc, axis=0, keepdims=True) * (1.0 / r)
    return jnp.maximum(yc * (gamma * jax.lax.rsqrt(var + EPS)) + beta, 0.0)


def _shift_rows(x, d, roll_like_jnp):
    """out[r] = x[r + d].  Rows that wrap around are zeroed downstream by the
    boundary masks, so an XLU rotate is exact here (no zero-fill copy needed)."""
    if d == 0:
        return x
    r = x.shape[0]
    s = (-d) % r if roll_like_jnp else d % r
    return pltpu.roll(x, shift=s, axis=0)


def _dirconv(xin, w_ref, coord, limit, step, roll_like_jnp):
    """3-tap conv (stride 1, pad 1) along H or W as 3 matmuls on the flat slab.

    xin: (R, Cin) f32 (rows laid out (n, h, w) row-major), w_ref: (3, Cin, Cout)
    bf16 VMEM ref.  Out-of-image taps are masked post-matmul in f32 (keeps the
    MXU operands pure bf16)."""
    acc = jnp.dot(xin.astype(jnp.bfloat16), w_ref[1],
                  preferred_element_type=jnp.float32)           # centre tap
    for k, off in ((0, -1), (2, 1)):
        xs = _shift_rows(xin, off * step, roll_like_jnp).astype(jnp.bfloat16)
        t = jnp.dot(xs, w_ref[k], preferred_element_type=jnp.float32)
        valid = jnp.logical_and(coord + off >= 0, coord + off < limit)
        acc = acc + t * valid.astype(jnp.float32)
    return acc


def _avgpool3x3(z, hh, ww, H, W, roll_like_jnp):
    """3x3 avg pool (stride 1, pad 1, count_include_pad=False) on a (R, C) f32 slab."""
    acc = z                                                     # (dh, dw) = (0, 0)
    for dh in (-1, 0, 1):
        vh = jnp.logical_and(hh + dh >= 0, hh + dh < H)
        for dw in (-1, 0, 1):
            if dh == 0 and dw == 0:
                continue
            vw = jnp.logical_and(ww + dw >= 0, ww + dw < W)
            m = jnp.logical_and(vh, vw).astype(jnp.float32)
            acc = acc + _shift_rows(z, dh * W + dw, roll_like_jnp) * m
    # Static per-row neighbour count (9 interior / 6 edge / 4 corner).
    nh = 1.0 + (hh > 0).astype(jnp.float32) + (hh < H - 1).astype(jnp.float32)
    nw = 1.0 + (ww > 0).astype(jnp.float32) + (ww < W - 1).astype(jnp.float32)
    return acc * (1.0 / (nh * nw))


# ----------------------------------------------------------------- fused kernel
def inception_c_kernel(
    x_ref, ws_ref, gs_ref, bs_ref,
    w1a_ref, g1a_ref, b1a_ref,
    w1b_ref, g1b_ref, b1b_ref,
    w21_ref, g21_ref, b21_ref,
    w22_ref, g22_ref, b22_ref,
    w2a_ref, g2a_ref, b2a_ref,
    w2b_ref, g2b_ref, b2b_ref,
    o_ref, *, H, W, roll_like_jnp,
):
    j = pl.program_id(0)
    x = x_ref[...]                                   # (R, 768) bf16
    R = x.shape[0]
    row = jax.lax.broadcasted_iota(jnp.int32, (R, 1), 0)
    hh = (row // W) % H
    ww = row % W

    # Half of the fused 1x1 "stem" matmul (K=768, N=384, bf16 MXU, f32 accum):
    #   j=0 -> [branch0 (128) | branch1_0 (256, zero-padded from 192)]
    #   j=1 -> [branch2_0 (256, zero-padded from 192) | branch3 pre-pool 1x1 (128)]
    y = jnp.dot(x, ws_ref[...], preferred_element_type=jnp.float32)   # (R, 384)
    g = gs_ref[...]                                  # (1, 384) f32
    b = bs_ref[...]

    conv = functools.partial(_dirconv, roll_like_jnp=roll_like_jnp)

    @pl.when(j == 0)
    def _():
        # branch0 -> output columns [0:128)
        o_ref[:, 0:128] = _bn_relu(y[:, 0:128], g[:, 0:128], b[:, 0:128])
        # branch1: shared 1x1 then sibling (1,3) / (3,1) convs -> cols [128:384)
        x1_0 = _bn_relu(y[:, 128:384], g[:, 128:384], b[:, 128:384])
        a = conv(x1_0, w1a_ref, ww, W, 1)            # (1,3), padding (0,1)
        o_ref[:, 128:256] = _bn_relu(a, g1a_ref[...], b1a_ref[...])
        a = conv(x1_0, w1b_ref, hh, H, W)            # (3,1), padding (1,0)
        o_ref[:, 256:384] = _bn_relu(a, g1b_ref[...], b1b_ref[...])

    @pl.when(j == 1)
    def _():
        # branch2 chain: 1x1 -> 3x1 -> 1x3 -> {1x3, 3x1} -> cols [384:640) of out.
        x2_0 = _bn_relu(y[:, 0:256], g[:, 0:256], b[:, 0:256])
        x2_1 = _bn_relu(conv(x2_0, w21_ref, hh, H, W), g21_ref[...], b21_ref[...])
        x2_2 = _bn_relu(conv(x2_1, w22_ref, ww, W, 1), g22_ref[...], b22_ref[...])
        o_ref[:, 0:128] = _bn_relu(conv(x2_2, w2a_ref, ww, W, 1),
                                   g2a_ref[...], b2a_ref[...])
        o_ref[:, 128:256] = _bn_relu(conv(x2_2, w2b_ref, hh, H, W),
                                     g2b_ref[...], b2b_ref[...])
        # branch3: its 1x1 conv is already in y[:, 256:384] (1x1 conv and the
        # count_include_pad=False avg-pool commute exactly); pool, then BN+ReLU.
        pooled = _avgpool3x3(y[:, 256:384], hh, ww, H, W, roll_like_jnp)
        o_ref[:, 256:384] = _bn_relu(pooled, g[:, 256:384], b[:, 256:384])


# ---------------------------------------------------------------------- wrappers
@functools.partial(jax.jit, static_argnames=("roll_like_jnp",))
def _forward_jit(x_nchw, params, roll_like_jnp):
    N, C, H, W = x_nchw.shape
    assert C == 768, "Inception_C expects 768 input channels"
    R = N * H * W
    assert R % 8 == 0
    x_flat = jnp.transpose(x_nchw, (0, 2, 3, 1)).reshape(R, C).astype(jnp.bfloat16)

    kern = functools.partial(inception_c_kernel, H=H, W=W, roll_like_jnp=roll_like_jnp)
    in_specs = [
        pl.BlockSpec((R, 768), lambda j: (0, 0)),        # x: whole slab, both steps
        pl.BlockSpec((768, 384), lambda j: (0, j)),      # fused stem weights, per-step half
        pl.BlockSpec((1, 384), lambda j: (0, j)),
        pl.BlockSpec((1, 384), lambda j: (0, j)),
    ] + [pl.BlockSpec(a.shape, lambda j, nd=a.ndim: (0,) * nd) for a in params[3:]]

    out_flat = pl.pallas_call(
        kern,
        out_shape=jax.ShapeDtypeStruct((R, 768), jnp.float32),
        grid=(2,),
        in_specs=in_specs,
        out_specs=pl.BlockSpec((R, 384), lambda j: (0, j)),
        compiler_params=pltpu.CompilerParams(
            dimension_semantics=("parallel",),            # 2 TCs on v7x, no-op elsewhere
            vmem_limit_bytes=32 * 1024 * 1024),
    )(x_flat, *params)
    return jnp.transpose(out_flat.reshape(N, H, W, 768), (0, 3, 1, 2))


def inception_c_forward(x_nchw, params):
    return _forward_jit(x_nchw, params, roll_like_jnp=_roll_matches_jnp())


# ------------------------------------------------------------------------ params
_LAYERS = {
    # name:        (cin, cout, (kh, kw))
    "branch0":    (768, 128, (1, 1)),
    "branch1_0":  (768, 192, (1, 1)),
    "branch1_1a": (192, 128, (1, 3)),
    "branch1_1b": (192, 128, (3, 1)),
    "branch2_0":  (768, 192, (1, 1)),
    "branch2_1":  (192, 224, (3, 1)),
    "branch2_2":  (224, 256, (1, 3)),
    "branch2_3a": (256, 128, (1, 3)),
    "branch2_3b": (256, 128, (3, 1)),
    "branch3_1":  (768, 128, (1, 1)),
}


def init_raw_params(key):
    raw = {}
    for name, (cin, cout, (kh, kw)) in _LAYERS.items():
        key, k1, k2, k3 = jax.random.split(key, 4)
        w = jax.random.normal(k1, (cout, cin, kh, kw), jnp.float32) * 0.05
        gamma = 1.0 + 0.1 * jax.random.normal(k2, (cout,), jnp.float32)
        beta = 0.1 * jax.random.normal(k3, (cout,), jnp.float32)
        raw[name] = (w, gamma, beta)
    return raw


def pack_params(raw):
    bf, f32 = jnp.bfloat16, jnp.float32

    def w1x1(w):      # (Cout, Cin, 1, 1) -> (Cin, Cout)
        return jnp.transpose(w[:, :, 0, 0], (1, 0))

    def taps_1x3(w):  # (Cout, Cin, 1, 3) -> (3, Cin, Cout), kw-major
        return jnp.transpose(w[:, :, 0, :], (2, 1, 0))

    def taps_3x1(w):  # (Cout, Cin, 3, 1) -> (3, Cin, Cout), kh-major
        return jnp.transpose(w[:, :, :, 0], (2, 1, 0))

    def pad_last(a, n):     # zero-pad last dim to n
        return jnp.pad(a, [(0, 0)] * (a.ndim - 1) + [(0, n - a.shape[-1])])

    def pad_cin(a, n):      # zero-pad Cin (dim -2) of (3, Cin, Cout) taps to n
        pads = [(0, 0)] * a.ndim
        pads[-2] = (0, n - a.shape[-2])
        return jnp.pad(a, pads)

    w0, g0, b0 = raw["branch0"]
    w10, g10, b10 = raw["branch1_0"]
    w20, g20, b20 = raw["branch2_0"]
    w3, g3, b3 = raw["branch3_1"]

    # Fused lane-dense 1x1 stem: [b0 | b1_0 pad->256 | b2_0 pad->256 | b3] = 768 cols.
    ws = jnp.concatenate([w1x1(w0), pad_last(w1x1(w10), 256),
                          pad_last(w1x1(w20), 256), w1x1(w3)], axis=1).astype(bf)
    gs = jnp.concatenate([g0, pad_last(g10, 256), pad_last(g20, 256), g3])[None, :].astype(f32)
    bs = jnp.concatenate([b0, pad_last(b10, 256), pad_last(b20, 256), b3])[None, :].astype(f32)

    def dirconv_params(name, taps_fn, cin_pad, cout_pad=None):
        w, g, b = raw[name]
        t = pad_cin(taps_fn(w), cin_pad)
        if cout_pad is not None:
            t, g, b = pad_last(t, cout_pad), pad_last(g, cout_pad), pad_last(b, cout_pad)
        return [t.astype(bf), g[None, :].astype(f32), b[None, :].astype(f32)]

    p = [ws, gs, bs]
    p += dirconv_params("branch1_1a", taps_1x3, 256)          # 192->256 Cin
    p += dirconv_params("branch1_1b", taps_3x1, 256)
    p += dirconv_params("branch2_1", taps_3x1, 256, 256)      # 192->256 Cin, 224->256 Cout
    p += dirconv_params("branch2_2", taps_1x3, 256)           # 224->256 Cin
    p += dirconv_params("branch2_3a", taps_1x3, 256)
    p += dirconv_params("branch2_3b", taps_3x1, 256)
    return tuple(p)


# --------------------------------------------------------------- pure-JAX reference
def _ref_bn_relu(y, gamma, beta):
    mean = jnp.mean(y, axis=(0, 1, 2), keepdims=True)
    var = jnp.mean(jnp.square(y - mean), axis=(0, 1, 2), keepdims=True)
    return jnp.maximum((y - mean) * (gamma / jnp.sqrt(var + EPS)) + beta, 0.0)


def _ref_basic(x, p, pad=(0, 0)):
    w, g, b = p
    xq = x.astype(jnp.bfloat16).astype(jnp.float32)
    wq = w.astype(jnp.bfloat16).astype(jnp.float32)
    y = jax.lax.conv_general_dilated(
        xq, jnp.transpose(wq, (2, 3, 1, 0)), (1, 1),
        ((pad[0], pad[0]), (pad[1], pad[1])),
        dimension_numbers=("NHWC", "HWIO", "NHWC"))
    return _ref_bn_relu(y, g, b)


@jax.jit
def inception_c_reference(x_nchw, raw):
    x = jnp.transpose(x_nchw, (0, 2, 3, 1)).astype(jnp.float32)
    x = x.astype(jnp.bfloat16).astype(jnp.float32)   # match kernel input quantization
    x0 = _ref_basic(x, raw["branch0"])
    x1_0 = _ref_basic(x, raw["branch1_0"])
    x1a = _ref_basic(x1_0, raw["branch1_1a"], (0, 1))
    x1b = _ref_basic(x1_0, raw["branch1_1b"], (1, 0))
    x2_0 = _ref_basic(x, raw["branch2_0"])
    x2_1 = _ref_basic(x2_0, raw["branch2_1"], (1, 0))
    x2_2 = _ref_basic(x2_1, raw["branch2_2"], (0, 1))
    x2a = _ref_basic(x2_2, raw["branch2_3a"], (0, 1))
    x2b = _ref_basic(x2_2, raw["branch2_3b"], (1, 0))
    # branch3: 3x3 avg pool (count_include_pad=False) then 1x1 conv + BN + ReLU.
    pad4 = ((0, 0), (1, 1), (1, 1), (0, 0))
    s = jax.lax.reduce_window(x, 0.0, jax.lax.add, (1, 3, 3, 1), (1, 1, 1, 1), pad4)
    c = jax.lax.reduce_window(jnp.ones_like(x[..., :1]), 0.0, jax.lax.add,
                              (1, 3, 3, 1), (1, 1, 1, 1), pad4)
    x3 = _ref_basic(s / c, raw["branch3_1"])
    out = jnp.concatenate([x0, x1a, x1b, x2a, x2b, x3], axis=-1)
    return jnp.transpose(out, (0, 3, 1, 2))


# --------------------------------------------------------------------------- main
if __name__ == "__main__":
    key = jax.random.PRNGKey(0)
    k_x, k_p = jax.random.split(key)
    # The module hard-codes 768 input channels; keep batch / spatial small.
    x = jax.random.normal(k_x, (2, 768, 8, 8), jnp.float32)
    raw = init_raw_params(k_p)
    params = pack_params(raw)

    out = jax.block_until_ready(inception_c_forward(x, params))
    assert out.shape == (2, 768, 8, 8), out.shape
    assert bool(jnp.all(jnp.isfinite(out)))

    ref = jax.block_until_ready(inception_c_reference(x, raw))
    err = float(jnp.max(jnp.abs(out - ref)))
    assert err < 0.2, f"max abs error vs reference = {err}"
    print("KERNEL_OK")
</pallas_src>

<mosaic_0001>
module attributes {stable_mosaic.version = 11 : i64} {
  func.func @kern(%arg0: memref<8x128xf32, #tpu.memory_space<vmem>>, %arg1: memref<8x128xf32, #tpu.memory_space<vmem>>) attributes {dimension_semantics = [], scalar_prefetch = 0 : i64, scratch_operands = 0 : i64, tpu.core_type = #tpu.core_type<tc>} {
    %c0 = arith.constant 0 : index
    %c0_0 = arith.constant 0 : index
    %0 = vector.load %arg0[%c0, %c0_0] : memref<8x128xf32, #tpu.memory_space<vmem>>, vector<8x128xf32>
    %c1_i32 = arith.constant 1 : i32
    %1 = tpu.dynamic_rotate %0 by %c1_i32 dim 0 : vector<8x128xf32>, i32 -> vector<8x128xf32>
    %c0_1 = arith.constant 0 : index
    %c0_2 = arith.constant 0 : index
    %2 = vector.load %arg1[%c0_1, %c0_2] : memref<8x128xf32, #tpu.memory_space<vmem>>, vector<8x128xf32>
    tpu.vector_store %arg1[%c0_1, %c0_2], %1 {strides = array<i32>} : memref<8x128xf32, #tpu.memory_space<vmem>>, vector<8x128xf32>,
    return
  }
}

</mosaic_0001>

<bundles_post_ra>
// kernel: tpu_custom_call.1
= control target key start
LH: loop header
LB: loop body
LE: loop exit
PB: predicated region body
PF: predicated region fallthrough
CT: control target
= control target key end

     0   :  { %6 = vsyncpa [#allocation3], 0  ;;  %s125_s0 = inlined_call_operand.hbm [shape: f32[8,128], index: 0, kind: input, shape index: {}]   ;;  %s126_s1 = inlined_call_operand.hbm [shape: f32[8,128], index: 1, kind: output, shape index: {}]  }
   0x1   :  { %7 = vsyncpa [#allocation4], 0  ;;  %s89_s6 = smov [#allocation2]   ;;  %s41_s10 = scalar_lea.hbm %s125_s0, 128 }
   0x2   :  { %s14_s7 = sshll.u32 %s89_s6, 4  ;;  %p42_p0 = scmp.ne.s32.totalorder %s125_s0, %s41_s10  ;;  %s15_s7 = int_to_ptr.vmem [resolvable:$true] %s14_s7 }
   0x3   :  { %p45_p1 = scmp.lt.u32.totalorder %s41_s10, %s125_s0 }
   0x5   :  { %p47_p2 = pnand %p45_p1, %p42_p0 }
   0x7   :  { %50 = shalt.err (!%p47_p2)
}
   0x8   :  { %s51_s15 = scalar_lea.vmem %s15_s7, 128  ;;  %p56_p4 = scmp.lt.s32.totalorder %s15_s7, %s15_s7 }
   0x9   :  { %p52_p3 = scmp.ne.s32.totalorder %s15_s7, %s51_s15  ;;  %p57_p5 = scmp.lt.s32.totalorder %s51_s15, %s51_s15 }
   0xb   :  { %p58_p6 = por %p57_p5, %p56_p4 }
   0xd   :  { %p59_p7 = pnand %p58_p6, %p52_p3 }
   0xf   :  { %62 = shalt.err (!%p59_p7)
}
  0x10   :  { %17 = dma.hbm_to_vmem [thread:$0]  %s125_s0, 128, %s15_s7, [#allocation3]  }
  0x11   :  { %85 = dma.done.wait [#allocation3], 128  }
  0x12   :  { %86 = vsyncadd [#allocation3], 4294967168  ;;  %s90_s18 = smov [#allocation5]   ;;  %v21_v0 = vld [vmem:[#allocation2] sm:$0xff] }
  0x13   :  { %s30_s19 = sshll.u32 %s90_s18, 4  ;;  %v22_v1 = vrot.slane %v21_v0, 7  ;;  %s31_s19 = int_to_ptr.vmem [resolvable:$true] %s30_s19 }
  0x14   :  { %s63_s20 = scalar_lea.vmem %s31_s19, 128  ;;  %p68_p9 = scmp.lt.s32.totalorder %s31_s19, %s31_s19 }
  0x15   :  { %23 = vst [vmem:[#allocation5] sm:$0xff] %v22_v1  ;;  %p64_p8 = scmp.ne.s32.totalorder %s31_s19, %s63_s20  ;;  %p69_p10 = scmp.lt.s32.totalorder %s63_s20, %s63_s20 }
  0x17   :  { %p70_p11 = por %p69_p10, %p68_p9 }
  0x19   :  { %p71_p12 = pnand %p70_p11, %p64_p8 }
  0x1b   :  { %74 = shalt.err (!%p71_p12)
}
  0x1c   :  { %s75_s23 = scalar_lea.hbm %s126_s1, 128 }
  0x1d   :  { %p76_p13 = scmp.ne.s32.totalorder %s126_s1, %s75_s23  ;;  %p79_p0 = scmp.lt.u32.totalorder %s75_s23, %s126_s1 }
  0x1f   :  { %p81_p1 = pnand %p79_p0, %p76_p13 }
  0x21   :  { %84 = shalt.err (!%p81_p1)
}
  0x22   :  { %33 = dma.vmem_to_hbm [thread:$0]  %s31_s19, 128, %s126_s1, [#allocation4]  }
  0x23   :  { %87 = dma.done.wait [#allocation4], 128  }
  0x24   :  { %88 = vsyncadd [#allocation4], 4294967168 }
  0x25   :  { %37 = vsyncpa [#allocation3], 1 }
  0x26   :  { %38 = vsyncpa [#allocation4], 1 }

</bundles_post_ra>
